<compile_context>
chip_gen: v7x
topology: tpu7x:2x2x1
jax: 0.10.0
libtpu: 0.0.40
codegen_flags: <defaults>
</compile_context>

<pallas_src>
import functools

import jax
import jax.numpy as jnp
from jax.experimental import pallas as pl
from jax.experimental.pallas import tpu as pltpu


def _round_up(x, m):
    return ((x + m - 1) // m) * m


def _mean_variance_partial_kernel(x_ref, t_ref, w_ref, part_ref, *, n_total, mid):
    """One batch tile: exp -> single MXU matmul for all moments -> partial sums."""
    tile_n = x_ref.shape[0]

    xb = x_ref[...]                                    # [T, K] logits, native dtype
    # Max is exact in any dtype; fold the f32 cast into the exp argument so no
    # separate full-tile f32 copy of the logits has to stay live across the reduce.
    x_max = jnp.max(xb, axis=1, keepdims=True)
    e = jnp.exp(xb.astype(jnp.float32) - x_max.astype(jnp.float32))   # [T, K], <= 1

    # One MXU matmul replaces three XLU cross-lane reductions:
    #   W[:, 0] = 1, W[:, 1] = a_c, W[:, 2] = a_c^2, remaining lanes zero.
    moments = jnp.dot(e, w_ref[...], preferred_element_type=jnp.float32)  # [T, 128]
    denom = moments[:, 0:1]        # sum(e)
    s1 = moments[:, 1:2]           # sum(e * a_c)
    s2 = moments[:, 2:3]           # sum(e * a_c^2)

    # Deferred softmax normalization: reciprocal only on the [T, 1] denominator.
    inv = pl.reciprocal(denom, approx=False)
    mean_c = s1 * inv              # E[a - mid]
    ex2_c = s2 * inv               # E[(a - mid)^2]

    t_c = t_ref[...].astype(jnp.float32) - jnp.float32(mid)   # centered target

    # Row-validity mask for the (possibly partial / padded) last tile.
    i = pl.program_id(0)
    row = jax.lax.broadcasted_iota(jnp.int32, (tile_n, 1), 0) + i * tile_n
    valid = row < n_total

    # Keep selects (not multiplies): padded rows can carry inf/NaN through exp.
    mse = jnp.where(valid, (mean_c - t_c) ** 2, 0.0)          # == (mean - t)^2
    var = jnp.where(valid, ex2_c - mean_c * mean_c, 0.0)      # shift-invariant var

    mse_part = jnp.sum(mse)
    var_part = jnp.sum(var)

    # This tile's partials -> its own lane-dense (8, 128) slab:
    # sublane 0 = MSE partial, sublane 1 = variance partial, rest = 0.
    sub = jax.lax.broadcasted_iota(jnp.int32, (8, 128), 0)
    part_ref[...] = jnp.where(sub == 0, mse_part,
                              jnp.where(sub == 1, var_part, jnp.float32(0.0)))


def mean_variance_loss(logits, target, *, lambda_1, lambda_2, start_age, end_age,
                       tile_n=4096):
    """JAX/Pallas port of MeanVarianceLoss.forward.

    Args:
      logits: [N, K] float array (f32 or bf16), K == end_age - start_age + 1.
      target: [N] array of target ages (any numeric dtype).
    Returns:
      (lambda_1 * mean_loss, lambda_2 * variance_loss) as float32 scalars.
    """
    n, k = logits.shape
    assert k == end_age - start_age + 1, "class count must match age range"
    mid = 0.5 * (start_age + end_age)

    # Tile selection: multiples of 8 sublanes; aim for >= 2 grid steps (so both
    # v7x TensorCores get work), capped at tile_n rows.
    if n <= 8:
        tile = n
    else:
        tile = min(tile_n, _round_up(-(-n // 2), 8))
    num_tiles = pl.cdiv(n, tile)

    target_col = target.astype(jnp.float32).reshape(n, 1)

    # Constant moment matrix, built once outside the kernel; constant index_map
    # means the ~35 KB block is DMA'd into VMEM a single time.
    ages_c = jnp.arange(start_age, end_age + 1, dtype=jnp.float32) - jnp.float32(mid)
    w = jnp.zeros((k, 128), jnp.float32)
    w = w.at[:, 0].set(1.0).at[:, 1].set(ages_c).at[:, 2].set(ages_c * ages_c)

    kernel = functools.partial(_mean_variance_partial_kernel, n_total=n, mid=mid)

    cost = pl.CostEstimate(
        flops=2 * n * k * 128 + 6 * n * k,
        transcendentals=n * k,
        bytes_accessed=n * k * logits.dtype.itemsize + n * 4 + k * 128 * 4
        + num_tiles * 8 * 128 * 4,
    )

    parts = pl.pallas_call(
        kernel,
        out_shape=jax.ShapeDtypeStruct((num_tiles * 8, 128), jnp.float32),
        grid=(num_tiles,),
        in_specs=[
            pl.BlockSpec((tile, k), lambda i: (i, 0)),    # logits tile
            pl.BlockSpec((tile, 1), lambda i: (i, 0)),    # target column tile
            pl.BlockSpec((k, 128), lambda i: (0, 0)),     # constant moment matrix
        ],
        out_specs=pl.BlockSpec((8, 128), lambda i: (i, 0)),
        compiler_params=pltpu.CompilerParams(
            dimension_semantics=("parallel",),
            vmem_limit_bytes=32 * 1024 * 1024),
        cost_estimate=cost,
    )(logits, target_col, w)

    # Tiny final reduction + normalization + lambda scaling in the wrapper.
    parts = parts.reshape(num_tiles, 8, 128)
    inv_n = jnp.float32(1.0 / n)
    mean_loss = jnp.float32(lambda_1) * (jnp.sum(parts[:, 0, 0]) * inv_n) * jnp.float32(0.5)
    variance_loss = jnp.float32(lambda_2) * (jnp.sum(parts[:, 1, 0]) * inv_n)
    return mean_loss, variance_loss


def _reference(logits, target, *, lambda_1, lambda_2, start_age, end_age):
    """Pure-JAX reference mirroring the PyTorch forward."""
    p = jax.nn.softmax(logits.astype(jnp.float32), axis=1)
    a = jnp.arange(start_age, end_age + 1, dtype=jnp.float32)
    mean = jnp.sum(p * a, axis=1)
    mse = (mean - target.astype(jnp.float32)) ** 2
    mean_loss = jnp.mean(mse) / 2.0
    b = (a[None, :] - mean[:, None]) ** 2
    variance_loss = jnp.mean(jnp.sum(p * b, axis=1))
    return lambda_1 * mean_loss, lambda_2 * variance_loss


def _check(logits, target, *, tile_n, rtol, atol, **cfg):
    ml, vl = mean_variance_loss(logits, target, tile_n=tile_n, **cfg)
    jax.block_until_ready((ml, vl))
    ml_ref, vl_ref = _reference(logits, target, **cfg)
    assert jnp.allclose(ml, ml_ref, rtol=rtol, atol=atol), (ml, ml_ref)
    assert jnp.allclose(vl, vl_ref, rtol=rtol, atol=atol), (vl, vl_ref)


if __name__ == "__main__":
    # Ages 0..69 -> 70 classes, small deterministic batches.
    cfg = dict(lambda_1=0.2, lambda_2=0.05, start_age=0, end_age=69)
    k = cfg["end_age"] - cfg["start_age"] + 1

    key = jax.random.PRNGKey(0)
    k1, k2, k3, k4 = jax.random.split(key, 4)

    # Test 1: small batch, single tile, float32.
    n1 = 8
    logits1 = jax.random.normal(k1, (n1, k), dtype=jnp.float32)
    target1 = jax.random.randint(k2, (n1,), 0, k).astype(jnp.float32)
    _check(logits1, target1, tile_n=4096, rtol=1e-4, atol=1e-4, **cfg)

    # Test 2: multi-tile grid with a partial last tile (exercises masking).
    n2 = 37
    logits2 = jax.random.normal(k3, (n2, k), dtype=jnp.float32)
    target2 = jax.random.randint(k4, (n2,), 0, k).astype(jnp.float32)
    _check(logits2, target2, tile_n=16, rtol=1e-4, atol=1e-4, **cfg)

    # Test 3: bf16 logits fed straight into the kernel (cast folded into exp arg).
    logits3 = logits1.astype(jnp.bfloat16)
    _check(logits3, target1, tile_n=4096, rtol=1e-3, atol=1e-3, **cfg)

    print("KERNEL_OK")
</pallas_src>

<mosaic_0001>
module attributes {stable_mosaic.version = 11 : i64} {
  func.func @_mean_variance_partial_kernel(%arg0: i32, %arg1: memref<8x70xf32, #tpu.memory_space<vmem>>, %arg2: memref<8x1xf32, #tpu.memory_space<vmem>>, %arg3: memref<70x128xf32, #tpu.memory_space<vmem>>, %arg4: memref<8x128xf32, #tpu.memory_space<vmem>>) attributes {dimension_semantics = [#tpu.dimension_semantics<parallel>], iteration_bounds = array<i64: 1>, scalar_prefetch = 0 : i64, scratch_operands = 0 : i64, tpu.core_type = #tpu.core_type<tc>, window_params = [{transform_indices = @transform_0, window_bounds = array<i64: 8, 70>}, {transform_indices = @transform_1, window_bounds = array<i64: 8, 1>}, {pipeline_mode = #tpu.pipeline_mode<synchronous>, transform_indices = @transform_2, window_bounds = array<i64: 70, 128>}, {transform_indices = @transform_3, window_bounds = array<i64: 8, 128>}]} {
    %c0 = arith.constant 0 : index
    %c0_0 = arith.constant 0 : index
    %0 = vector.load %arg1[%c0, %c0_0] : memref<8x70xf32, #tpu.memory_space<vmem>>, vector<8x70xf32>
    %cst = arith.constant dense<0xFF800000> : vector<8xf32>
    %1 = vector.multi_reduction <maximumf>, %0, %cst [1] : vector<8x70xf32> to vector<8xf32>
    %2 = vector.shape_cast %1 : vector<8xf32> to vector<8x1xf32>
    %3 = vector.broadcast %2 : vector<8x1xf32> to vector<8x70xf32>
    %4 = arith.subf %0, %3 : vector<8x70xf32>
    %5 = math.exp %4 : vector<8x70xf32>
    %c0_1 = arith.constant 0 : index
    %c0_2 = arith.constant 0 : index
    %6 = vector.load %arg3[%c0_1, %c0_2] : memref<70x128xf32, #tpu.memory_space<vmem>>, vector<70x128xf32>
    %cst_3 = arith.constant dense<0.000000e+00> : vector<8x128xf32>
    %7 = tpu.matmul %5, %6, %cst_3 {dimension_numbers = #tpu.dot_dimension_numbers<[1], [0], [0], [1], [0, 0, 1, 1], [], []>} : vector<8x70xf32>, vector<70x128xf32>, vector<8x128xf32> -> vector<8x128xf32>
    %8 = vector.extract_strided_slice %7 {offsets = [0, 0], sizes = [8, 1], strides = [1, 1]} : vector<8x128xf32> to vector<8x1xf32>
    %9 = vector.extract_strided_slice %7 {offsets = [0, 1], sizes = [8, 1], strides = [1, 1]} : vector<8x128xf32> to vector<8x1xf32>
    %10 = vector.extract_strided_slice %7 {offsets = [0, 2], sizes = [8, 1], strides = [1, 1]} : vector<8x128xf32> to vector<8x1xf32>
    %11 = tpu.reciprocal %8 : vector<8x1xf32> -> vector<8x1xf32>
    %12 = arith.mulf %9, %11 : vector<8x1xf32>
    %13 = arith.mulf %10, %11 : vector<8x1xf32>
    %c0_4 = arith.constant 0 : index
    %c0_5 = arith.constant 0 : index
    %14 = vector.load %arg2[%c0_4, %c0_5] : memref<8x1xf32, #tpu.memory_space<vmem>>, vector<8x1xf32>
    %cst_6 = arith.constant 3.450000e+01 : f32
    %15 = vector.broadcast %cst_6 : f32 to vector<8x1xf32>
    %16 = arith.subf %14, %15 : vector<8x1xf32>
    %17 = tpu.iota {dimensions = array<i32: 0>} : vector<8x1xi32>
    %c8_i32 = arith.constant 8 : i32
    %18 = arith.muli %arg0, %c8_i32 : i32
    %19 = vector.broadcast %18 : i32 to vector<8x1xi32>
    %20 = arith.addi %17, %19 : vector<8x1xi32>
    %c8_i32_7 = arith.constant 8 : i32
    %21 = vector.broadcast %c8_i32_7 : i32 to vector<8x1xi32>
    %22 = arith.cmpi slt, %20, %21 : vector<8x1xi32>
    %23 = arith.subf %12, %16 : vector<8x1xf32>
    %24 = arith.mulf %23, %23 : vector<8x1xf32>
    %cst_8 = arith.constant 0.000000e+00 : f32
    %25 = vector.broadcast %cst_8 : f32 to vector<8x1xf32>
    %26 = arith.select %22, %24, %25 : vector<8x1xi1>, vector<8x1xf32>
    %27 = arith.mulf %12, %12 : vector<8x1xf32>
    %28 = arith.subf %13, %27 : vector<8x1xf32>
    %cst_9 = arith.constant 0.000000e+00 : f32
    %29 = vector.broadcast %cst_9 : f32 to vector<8x1xf32>
    %30 = arith.select %22, %28, %29 : vector<8x1xi1>, vector<8x1xf32>
    %31 = vector.shape_cast %26 : vector<8x1xf32> to vector<1x8x1xf32>
    %cst_10 = arith.constant dense<0.000000e+00> : vector<1xf32>
    %32 = vector.multi_reduction <add>, %31, %cst_10 [1, 2] : vector<1x8x1xf32> to vector<1xf32>
    %33 = vector.shape_cast %32 : vector<1xf32> to vector<1x1x1xf32>
    %34 = vector.extract %33[0, 0, 0] : f32 from vector<1x1x1xf32>
    %35 = vector.shape_cast %30 : vector<8x1xf32> to vector<1x8x1xf32>
    %cst_11 = arith.constant dense<0.000000e+00> : vector<1xf32>
    %36 = vector.multi_reduction <add>, %35, %cst_11 [1, 2] : vector<1x8x1xf32> to vector<1xf32>
    %37 = vector.shape_cast %36 : vector<1xf32> to vector<1x1x1xf32>
    %38 = vector.extract %37[0, 0, 0] : f32 from vector<1x1x1xf32>
    %39 = tpu.iota {dimensions = array<i32: 0>} : vector<8x128xi32>
    %c0_i32 = arith.constant 0 : i32
    %40 = vector.broadcast %c0_i32 : i32 to vector<8x128xi32>
    %41 = arith.cmpi eq, %39, %40 : vector<8x128xi32>
    %c1_i32 = arith.constant 1 : i32
    %42 = vector.broadcast %c1_i32 : i32 to vector<8x128xi32>
    %43 = arith.cmpi eq, %39, %42 : vector<8x128xi32>
    %cst_12 = arith.constant 0.000000e+00 : f32
    %44 = vector.broadcast %38 : f32 to vector<8x128xf32>
    %45 = vector.broadcast %cst_12 : f32 to vector<8x128xf32>
    %46 = arith.select %43, %44, %45 : vector<8x128xi1>, vector<8x128xf32>
    %47 = vector.broadcast %34 : f32 to vector<8x128xf32>
    %48 = arith.select %41, %47, %46 : vector<8x128xi1>, vector<8x128xf32>
    %c0_13 = arith.constant 0 : index
    %c0_14 = arith.constant 0 : index
    %49 = vector.load %arg4[%c0_13, %c0_14] : memref<8x128xf32, #tpu.memory_space<vmem>>, vector<8x128xf32>
    tpu.vector_store %arg4[%c0_13, %c0_14], %48 {strides = array<i32>} : memref<8x128xf32, #tpu.memory_space<vmem>>, vector<8x128xf32>,
    return
  }
  func.func @transform_0(%arg0: i32) -> (i32, i32) {
    %c0_i32 = arith.constant 0 : i32
    %c0_i32_0 = arith.constant 0 : i32
    return %arg0, %c0_i32 : i32, i32
  }
  func.func @transform_1(%arg0: i32) -> (i32, i32) {
    %c0_i32 = arith.constant 0 : i32
    %c0_i32_0 = arith.constant 0 : i32
    return %arg0, %c0_i32 : i32, i32
  }
  func.func @transform_2(%arg0: i32) -> (i32, i32) {
    %c0_i32 = arith.constant 0 : i32
    %c0_i32_0 = arith.constant 0 : i32
    %c0_i32_1 = arith.constant 0 : i32
    return %c0_i32, %c0_i32_0 : i32, i32
  }
  func.func @transform_3(%arg0: i32) -> (i32, i32) {
    %c0_i32 = arith.constant 0 : i32
    %c0_i32_0 = arith.constant 0 : i32
    return %arg0, %c0_i32 : i32, i32
  }
}

</mosaic_0001>

<bundles_post_ra>
// kernel: tpu_custom_call.1
= control target key start
LH: loop header
LB: loop body
LE: loop exit
PB: predicated region body
PF: predicated region fallthrough
CT: control target
= control target key end

     0   :  { %8 = vsyncpa [#allocation3], 0  ;;  %s382_s0 = inlined_call_operand.vmem [shape: f32[8,70], index: 0, kind: input, shape index: {}]   ;;  %s383_s1 = inlined_call_operand.vmem [shape: f32[8,1], index: 1, kind: input, shape index: {}]   ;;  %s384_s2 = inlined_call_operand.hbm [shape: f32[70,128], index: 2, kind: input, shape index: {}]   ;;  %s385_s3 = inlined_call_operand.hbm [shape: f32[8,128], index: 3, kind: output, shape index: {}]  }
   0x1   :  { %9 = vsyncpa [#allocation4], 0  ;;  %s319_s12 = smov [#allocation2]   ;;  %s271_s16 = scalar_lea.hbm %s384_s2, 1152 }
   0x2   :  { %s19_s13 = sshll.u32 %s319_s12, 4  ;;  %p272_p0 = scmp.ne.s32.totalorder %s384_s2, %s271_s16  ;;  %s20_s13 = int_to_ptr.vmem [resolvable:$true] %s19_s13 }
   0x3   :  { %p275_p1 = scmp.lt.u32.totalorder %s271_s16, %s384_s2 }
   0x5   :  { %p277_p2 = pnand %p275_p1, %p272_p0 }
   0x7   :  { %280 = shalt.err (!%p277_p2)
}
   0x8   :  { %s281_s21 = scalar_lea.vmem %s20_s13, 1152  ;;  %p286_p4 = scmp.lt.s32.totalorder %s20_s13, %s20_s13 }
   0x9   :  { %p282_p3 = scmp.ne.s32.totalorder %s20_s13, %s281_s21  ;;  %p287_p5 = scmp.lt.s32.totalorder %s281_s21, %s281_s21 }
   0xb   :  { %p288_p6 = por %p287_p5, %p286_p4 }
   0xd   :  { %p289_p7 = pnand %p288_p6, %p282_p3 }
   0xf   :  { %292 = shalt.err (!%p289_p7)
}
  0x10   :  { %s320_s22 = smov 128   ;;  %s321_s23 = smov 8  }
  0x11   :  { %25 = dma.hbm_to_vmem [thread:$0]  %s384_s2, 1152, %s20_s13, [#allocation3], %s320_s22, %s320_s22, %s321_s23  }
  0x12   :  { %315 = dma.done.wait [#allocation3], 1152  }
  0x13   :  { %316 = vsyncadd [#allocation3], 4294966144  ;;  %v322_v0 = vmov 0.0|0.0   ;;  %vm30_vm0 = vcmask 572416   ;;  %v29_v1 = vld [vmem:[%s382_s0] sm:$0xff]  ;;  %v38_v3 = vld [vmem:[#allocation2 + $0x8] sm:$0xff]  ;;  %v135_v54 = vlaneseq }
  0x14   :  { %240 = vmatprep.subr.bf16.mxu0 %v322_v0  ;;  %v37_v2 = vld [vmem:[#allocation2] sm:$0xff]  ;;  %v31_v4 = vsel %vm30_vm0, %v29_v1, -inf  ;;  %v39_v6 = vld [vmem:[#allocation2 + $0x10] sm:$0xff]  ;;  %v40_v7 = vld [vmem:[#allocation2 + $0x18] sm:$0xff]  ;;  %vm323_vm1 = vmmov 0   ;;  %v324_v15 = vmov 0.0  }
  0x15   :  { %v241_v5 = vpack.c.bf16 %v38_v3, %v37_v2  ;;  %32 = vmax.xlane.f32.xlu0 %v31_v4  ;;  %v244_v8 = vpack.c.bf16 %v40_v7, %v39_v6  ;;  %v41_v9 = vld [vmem:[#allocation2 + $0x20] sm:$0xff]  ;;  %v42_v10 = vld [vmem:[#allocation2 + $0x28] sm:$0xff]  ;;  %v43_v12 = vld [vmem:[#allocation2 + $0x30] sm:$0xff]  ;;  %237 = vmatprep.mubr.msk.f32.mxu0 %vm323_vm1, %v324_v15  ;;  %vm49_vm2 = vcmask 1045504   ;;  %s325_s28 = smov 1   ;;  %s326_s29 = smov 2  }
  0x16   :  { %v247_v11 = vpack.c.bf16 %v42_v10, %v41_v9  ;;  %v44_v13 = vld [vmem:[#allocation2 + $0x38] sm:$0xff]  ;;  %v45_v16 = vld [vmem:[#allocation2 + $0x40] sm:$0x3f]  ;;  %s327_s30 = smov 127   ;;  %vm159_vm3 = vcmask 7168   ;;  %v136_v55 = vshrl.u32 %v135_v54, 7 }
  0x17   :  { %242 = vmatpush3.bf16.msra.mxu0 %v241_v5  ;;  %v250_v14 = vpack.c.bf16 %v44_v13, %v43_v12  ;;  %v133_v21 = vld [vmem:[%s383_s1] sm:$0xff]  ;;  %s328_s1 = smov 126   ;;  %s329_s5 = smov [#allocation5]  }
  0x18   :  { %243 = vmatprep.subr.bf16.mxu0 %v322_v0  ;;  %v208_v22 = vadd.f32 -34.5, %v133_v21  ;;  %vm185_vm4 = vcmp.eq.s32.totalorder %v136_v55, 1  ;;  %s197_s6 = sshll.u32 %s329_s5, 4  ;;  %vm184_vm5 = vcmp.eq.s32.totalorder %v136_v55, 0  ;;  %s198_s6 = int_to_ptr.vmem [resolvable:$true] %s197_s6 }
  0x19   :  { %s293_s8 = scalar_lea.vmem %s198_s6, 128  ;;  %p298_p9 = scmp.lt.s32.totalorder %s198_s6, %s198_s6 }
  0x1a   :  { %142 = vrot.lane.b32.xlu1 %v208_v22, %s325_s28  ;;  %p294_p8 = scmp.ne.s32.totalorder %s198_s6, %s293_s8  ;;  %p299_p10 = scmp.lt.s32.totalorder %s293_s8, %s293_s8 }
  0x1b   :  { %245 = vmatpush3.bf16.msra.mxu0 %v244_v8 }
  0x1c   :  { %246 = vmatprep.subr.bf16.mxu0 %v322_v0  ;;  %p300_p11 = por %p299_p10, %p298_p9 }
  0x1e   :  { %p301_p12 = pnand %p300_p11, %p294_p8 }
  0x1f   :  { %248 = vmatpush3.bf16.msra.mxu0 %v247_v11 }
  0x20   :  { %249 = vmatprep.subr.bf16.mxu0 %v322_v0 }
  0x23   :  { %251 = vmatpush3.bf16.msra.mxu0 %v250_v14 }
  0x24   :  { %235 = vmatprep.subr.mxu0 %v324_v15 }
  0x27   :  { %236 = vmatpush3.msk.msra.mxu0 %vm49_vm2, %v45_v16 }
  0x8c   :  { %v143_v28 = vpop.permute.xlu1 %142 }
  0xa2   :  { %v33_v17 = vpop.xlane.xlu0 %32 }
  0xa3   :  { %v34_v18 = vsub.f32 %v29_v1, %v33_v17 }
  0xa5   :  { %v35_v19 = vmul.f32 1.442695, %v34_v18 }
  0xa7   :  { %267 = vpow2.f32 %v35_v19 }
  0xb1   :  { %v268_v20 = vpop.eup %267 }
  0xb2   :  { %238 = vmatmul.mubr.msk.f32.vlgmr.msra.gmra.mrb[0].mxu0 %vm30_vm0, %v268_v20 }
 0x185   :  { %v119_v23 = vpop.f32.mrb[0].mxu0 }
 0x186   :  { %269 = vrcp.f32 %v119_v23  ;;  %v239_v24 = vpop.f32.mrb[1].mxu0 }
 0x190   :  { %v270_v25 = vpop.eup %269 }
 0x191   :  { %129 = vrot.lane.b32.xlu1 %v270_v25, %s326_s29  ;;  %125 = vrot.lane.b32.xlu0 %v270_v25, %s325_s28 }
 0x203   :  { %v126_v26 = vpop.permute.xlu0 %125  ;;  %v130_v32 = vpop.permute.xlu1 %129 }
 0x204   :  { %v128_v27 = vmul.f32 %v126_v26, %v119_v23  ;;  %v132_v33 = vmul.f32 %v130_v32, %v119_v23 }
 0x206   :  { %v145_v29 = vsub.f32 %v128_v27, %v143_v28  ;;  %v148_v30 = vmul.f32 %v128_v27, %v128_v27 }
 0x208   :  { %150 = vrot.lane.b32.xlu1 %v148_v30, %s325_s28  ;;  %v146_v31 = vmul.f32 %v145_v29, %v145_v29 }
 0x20c   :  { %156 = vrot.lane.b32.xlu1 %v146_v31, %s327_s30 }
 0x27a   :  { %v151_v34 = vpop.permute.xlu1 %150 }
 0x27b   :  { %v153_v35 = vsub.f32 %v132_v33, %v151_v34 }
 0x27d   :  { %171 = vrot.lane.b32.xlu1 %v153_v35, %s328_s1 }
 0x27e   :  { %v157_v36 = vpop.permute.xlu1 %156 }
 0x27f   :  { %v160_v37 = vsel %vm159_vm3, %v157_v36, 0.0 }
 0x2a1   :  { %161 = vadd.xlane.f32.xlu1 %v160_v37 }
 0x2ef   :  { %v172_v38 = vpop.permute.xlu1 %171 }
 0x2f0   :  { %v174_v39 = vsel %vm159_vm3, %v172_v38, 0.0 }
 0x2f1   :  { %175 = vadd.xlane.f32.xlu0 %v174_v39 }
 0x32e   :  { %v162_v40 = vpop.xlane.xlu1 %161 }
 0x32f   :  { %v163_v41 = vrot.slane %v162_v40, 4 }
 0x331   :  { %v164_v42 = vadd.f32 %v163_v41, %v162_v40 }
 0x333   :  { %v165_v43 = vrot.slane %v164_v42, 2 }
 0x335   :  { %v166_v44 = vadd.f32 %v165_v43, %v164_v42 }
 0x337   :  { %v167_v45 = vrot.slane %v166_v44, 1 }
 0x339   :  { %v168_v46 = vadd.f32 %v167_v45, %v166_v44 }
 0x33b   :  { %252 = vpush %v168_v46 }
 0x36c   :  { %s253_s4 = spop %252 }
 0x36d   :  { %v188_v57 = vstv %s253_s4 }
 0x37e   :  { %v176_v47 = vpop.xlane.xlu0 %175 }
 0x37f   :  { %v177_v48 = vrot.slane %v176_v47, 4 }
 0x381   :  { %v178_v49 = vadd.f32 %v177_v48, %v176_v47 }
 0x383   :  { %v179_v50 = vrot.slane %v178_v49, 2 }
 0x385   :  { %v180_v51 = vadd.f32 %v179_v50, %v178_v49 }
 0x387   :  { %v181_v52 = vrot.slane %v180_v51, 1 }
 0x389   :  { %v182_v53 = vadd.f32 %v181_v52, %v180_v51 }
 0x38b   :  { %254 = vpush %v182_v53 }
 0x3bc   :  { %s255_s7 = spop %254 }
 0x3bd   :  { %v186_v56 = vstv %s255_s7 }
 0x3be   :  { %v187_v58 = vsel %vm185_vm4, %v186_v56, 0.0 }
 0x3bf   :  { %v189_v59 = vsel %vm184_vm5, %v188_v57, %v187_v58 }
 0x3c0   :  { %190 = vst [vmem:[#allocation5] sm:$0xff] %v189_v59 }
 0x3c1   :  { %304 = shalt.err (!%p301_p12)
}
 0x3c2   :  { %s305_s11 = scalar_lea.hbm %s385_s3, 128 }
 0x3c3   :  { %p306_p13 = scmp.ne.s32.totalorder %s385_s3, %s305_s11  ;;  %p309_p0 = scmp.lt.u32.totalorder %s305_s11, %s385_s3 }
 0x3c5   :  { %p311_p1 = pnand %p309_p0, %p306_p13 }
 0x3c7   :  { %314 = shalt.err (!%p311_p1)
}
 0x3c8   :  { %200 = dma.vmem_to_hbm [thread:$0]  %s198_s6, 128, %s385_s3, [#allocation4]  }
 0x3c9   :  { %317 = dma.done.wait [#allocation4], 128  }
 0x3ca   :  { %318 = vsyncadd [#allocation4], 4294967168 }
 0x3cb   :  { %204 = vsyncpa [#allocation3], 1 }
 0x3cc   :  { %205 = vsyncpa [#allocation4], 1 }

</bundles_post_ra>
